<compile_context>
chip_gen: v7x
topology: tpu7x:2x2x1
jax: 0.10.0
libtpu: 0.0.40
codegen_flags: <defaults>
</compile_context>

<pallas_src>
import functools

import jax
import jax.numpy as jnp
from jax.experimental import pallas as pl
from jax.experimental.pallas import tpu as pltpu


# Safe on every generation (v5e/v6e: 128 MiB physical, v7x: 64 MiB physical).
_VMEM_LIMIT_BYTES = 32 * 1024 * 1024


def _pick_block_n(n, target, itemsize):
    """Sequence-tile rows.

    Full extent if it already fits; otherwise a multiple of 128 (MXU
    contraction dim) when the target allows, never below the sublane granule
    of the input dtype (16 for bf16, 8 for f32).  bn does NOT need to divide
    n: the grid uses cdiv + an in-kernel mask for the last tile.
    """
    if n <= target:
        return n
    granule = 128 if target >= 128 else max(8, 32 // max(1, itemsize))
    return max(granule, (target // granule) * granule)


def _softmax_last(t, approx):
    """Numerically stable softmax along the last axis (f32 math).

    The reciprocal of the row-sum is hoisted out of the per-element divide;
    with approx=True it runs on the otherwise-idle EUP instead of the VALU.
    """
    m = jnp.max(t, axis=-1, keepdims=True)
    e = jnp.exp(t - m)
    denom = jnp.sum(e, axis=-1, keepdims=True)
    inv = pl.reciprocal(denom, approx=True) if approx else 1.0 / denom
    return e * inv


def _to_mxu(t, mxu_dtype):
    return t if mxu_dtype is None else t.astype(mxu_dtype)


# --------------------------------------------------------------------------
# Pass 1 (two-pass path): accumulate context over sequence tiles, and at the
# per-batch flush fuse it with the (pre-scaled) output projection:
#   M_b = context_b^T @ (scale * W_out^T)        (f32, once per batch)
# --------------------------------------------------------------------------
def _context_kernel(x_ref, wq_ref, wk_ref, wfuse_ref, m_ref, acc_ref, *,
                    seq_len, block_n, approx, mxu_dtype, needs_mask):
    # x_ref:     (1, bn, D)  sequence tile of the current batch
    # wq_ref:    (D, D)      to_qkv q-rows, transposed (right-multiply)
    # wk_ref:    (D, D)      to_qkv k-rows, transposed
    # wfuse_ref: (D, D)      scale * W_out^T  (f32)
    # m_ref:     (1, D, D)   per-batch fused matrix M (resident across N axis)
    # acc_ref:   (D, D)      f32 context accumulator (kept f32 for accuracy
    #                        even when the emitted M is bf16)
    n_idx = pl.program_id(1)

    @pl.when(n_idx == 0)
    def _init():
        acc_ref[...] = jnp.zeros_like(acc_ref)

    x = x_ref[0]                                                     # (bn, D)
    if needs_mask:
        rows = (jax.lax.broadcasted_iota(jnp.int32, (block_n, 1), 0)
                + n_idx * block_n)
        valid = rows < seq_len
        x = jnp.where(valid, x, jnp.zeros_like(x))

    q = _softmax_last(
        jnp.dot(x, wq_ref[...], preferred_element_type=jnp.float32), approx)
    k = _softmax_last(
        jnp.dot(x, wk_ref[...], preferred_element_type=jnp.float32), approx)
    if needs_mask:
        k = jnp.where(valid, k, 0.0)   # zero contributions from padded rows

    # context[d, e] += sum_n q[n, d] * k[n, e]  (contract over the tile rows)
    acc_ref[...] += jax.lax.dot_general(
        _to_mxu(q, mxu_dtype), _to_mxu(k, mxu_dtype),
        (((0,), (0,)), ((), ())), preferred_element_type=jnp.float32)

    @pl.when(n_idx == pl.num_programs(1) - 1)
    def _flush():
        # M[e, f] = sum_d context[d, e] * (scale * W_out^T)[d, f]   (f32)
        m = jax.lax.dot_general(
            acc_ref[...], wfuse_ref[...],
            (((0,), (0,)), ((), ())), preferred_element_type=jnp.float32)
        m_ref[0] = m.astype(m_ref.dtype)


# --------------------------------------------------------------------------
# Pass 2 (two-pass path): y = softmax(x @ Wv) @ M_b + b
# (the third matmul of the original formulation is gone -- fused into M_b).
# --------------------------------------------------------------------------
def _output_kernel(x_ref, m_ref, wv_ref, bout_ref, o_ref, *, approx, mxu_dtype):
    x = x_ref[0]                                                     # (bn, D)
    v = _softmax_last(
        jnp.dot(x, wv_ref[...], preferred_element_type=jnp.float32), approx)
    # m_ref is already in the MXU dtype -> no per-tile cast needed.
    y = jnp.dot(_to_mxu(v, mxu_dtype), m_ref[0],
                preferred_element_type=jnp.float32) + bout_ref[...]
    o_ref[0] = y.astype(o_ref.dtype)


# --------------------------------------------------------------------------
# Fused single-call path (grid over B only): x is read from HBM once, the
# context/M never leave VMEM.  Used when the per-batch (N, D) slab fits.
# --------------------------------------------------------------------------
def _fused_kernel(x_ref, wq_ref, wk_ref, wv_ref, wfuse_ref, bout_ref, o_ref, *,
                  approx, mxu_dtype):
    x = x_ref[0]                                                     # (N, D)
    q = _softmax_last(
        jnp.dot(x, wq_ref[...], preferred_element_type=jnp.float32), approx)
    k = _softmax_last(
        jnp.dot(x, wk_ref[...], preferred_element_type=jnp.float32), approx)
    v = _softmax_last(
        jnp.dot(x, wv_ref[...], preferred_element_type=jnp.float32), approx)

    ctx = jax.lax.dot_general(
        _to_mxu(q, mxu_dtype), _to_mxu(k, mxu_dtype),
        (((0,), (0,)), ((), ())), preferred_element_type=jnp.float32)
    m = jax.lax.dot_general(
        ctx, wfuse_ref[...],
        (((0,), (0,)), ((), ())), preferred_element_type=jnp.float32)
    y = jnp.dot(_to_mxu(v, mxu_dtype), _to_mxu(m, mxu_dtype),
                preferred_element_type=jnp.float32) + bout_ref[...]
    o_ref[0] = y.astype(o_ref.dtype)


def linear_attention(x, w_qkv, w_out, b_out, *, block_n=512,
                     mxu_dtype=jnp.bfloat16, approx_reciprocal=True,
                     fused=None, vmem_limit_bytes=_VMEM_LIMIT_BYTES):
    """LinearAttention forward.

    x: (B, N, D); w_qkv: (3D, D); w_out: (D, D); b_out: (D,).

    block_n:    target sequence-tile rows for the two-pass path (picked as a
                multiple of 128; does not need to divide N).
    mxu_dtype:  MXU operand dtype (default bf16 on all generations); softmax
                math, context accumulation and the per-batch fuse matmul stay
                f32.  Pass mxu_dtype=None for a pure-f32 path.
    fused:      True/False to force the single-call / two-pass path; None
                auto-selects based on a conservative VMEM estimate.
    """
    B, N, D = x.shape
    scale = float(D) ** (-0.5)

    # Pre-split, lane-aligned right-multiply weights (no in-kernel column
    # slicing of the fused qkv weight).
    wq_t = jnp.transpose(w_qkv[:D])
    wk_t = jnp.transpose(w_qkv[D:2 * D])
    wv_t = jnp.transpose(w_qkv[2 * D:])
    # Output projection and q-scale folded into the per-batch flush (f32 for
    # the accuracy of the fuse matmul).
    wfuse = (scale * jnp.transpose(w_out)).astype(jnp.float32)
    bout2 = b_out.reshape(1, D).astype(jnp.float32)

    x_in = x if mxu_dtype is None else x.astype(mxu_dtype)
    if mxu_dtype is not None:
        wq_t, wk_t, wv_t = (w.astype(mxu_dtype) for w in (wq_t, wk_t, wv_t))
    m_dtype = jnp.float32 if mxu_dtype is None else mxu_dtype

    in_isz = jnp.dtype(x_in.dtype).itemsize
    out_isz = jnp.dtype(x.dtype).itemsize
    m_isz = jnp.dtype(m_dtype).itemsize

    if fused is None:
        # Double-buffered x/out slabs + f32 q/k/v temporaries + weights vs.
        # half the scoped-VMEM budget (conservative).
        slab_est = (2 * N * D * (in_isz + out_isz) + 5 * N * D * 4
                    + 10 * D * D * 4)
        fused = slab_est <= vmem_limit_bytes // 2

    if fused:
        cost = pl.CostEstimate(
            flops=int(B * (8 * N * D * D + 2 * D * D * D)),
            transcendentals=int(3 * B * N * D),
            bytes_accessed=int(B * N * D * (in_isz + out_isz) + 5 * D * D * 4),
        )
        return pl.pallas_call(
            functools.partial(_fused_kernel, approx=approx_reciprocal,
                              mxu_dtype=mxu_dtype),
            out_shape=jax.ShapeDtypeStruct((B, N, D), x.dtype),
            grid_spec=pltpu.PrefetchScalarGridSpec(
                num_scalar_prefetch=0,
                grid=(B,),
                in_specs=[
                    pl.BlockSpec((1, N, D), lambda b: (b, 0, 0)),
                    pl.BlockSpec((D, D), lambda b: (0, 0)),
                    pl.BlockSpec((D, D), lambda b: (0, 0)),
                    pl.BlockSpec((D, D), lambda b: (0, 0)),
                    pl.BlockSpec((D, D), lambda b: (0, 0)),
                    pl.BlockSpec((1, D), lambda b: (0, 0)),
                ],
                out_specs=pl.BlockSpec((1, N, D), lambda b: (b, 0, 0)),
            ),
            compiler_params=pltpu.CompilerParams(
                dimension_semantics=("parallel",),
                vmem_limit_bytes=vmem_limit_bytes),
            cost_estimate=cost,
        )(x_in, wq_t, wk_t, wv_t, wfuse, bout2)

    # ------------------------------ two-pass path ------------------------------
    bn = _pick_block_n(N, block_n, in_isz)
    n_tiles = pl.cdiv(N, bn)
    needs_mask = (N % bn) != 0

    # Pass 1: M_b = (sum_n softmax(q)_n (outer) softmax(k)_n)^T @ (scale W_out^T)
    ctx_cost = pl.CostEstimate(
        flops=int(B * (6 * N * D * D + 2 * D * D * D)),
        transcendentals=int(2 * B * N * D),
        bytes_accessed=int(B * N * D * in_isz + 3 * D * D * 4
                           + B * D * D * m_isz),
    )
    m_fused = pl.pallas_call(
        functools.partial(_context_kernel, seq_len=N, block_n=bn,
                          approx=approx_reciprocal, mxu_dtype=mxu_dtype,
                          needs_mask=needs_mask),
        out_shape=jax.ShapeDtypeStruct((B, D, D), m_dtype),
        grid_spec=pltpu.PrefetchScalarGridSpec(
            num_scalar_prefetch=0,
            grid=(B, n_tiles),
            in_specs=[
                pl.BlockSpec((1, bn, D), lambda b, n: (b, n, 0)),
                pl.BlockSpec((D, D), lambda b, n: (0, 0)),
                pl.BlockSpec((D, D), lambda b, n: (0, 0)),
                pl.BlockSpec((D, D), lambda b, n: (0, 0)),
            ],
            out_specs=pl.BlockSpec((1, D, D), lambda b, n: (b, 0, 0)),
            scratch_shapes=[pltpu.VMEM((D, D), jnp.float32)],
        ),
        compiler_params=pltpu.CompilerParams(
            dimension_semantics=("parallel", "arbitrary"),
            vmem_limit_bytes=vmem_limit_bytes),
        cost_estimate=ctx_cost,
    )(x_in, wq_t, wk_t, wfuse)

    # Pass 2: y = softmax(x @ Wv) @ M_b + b
    out_cost = pl.CostEstimate(
        flops=int(4 * B * N * D * D),
        transcendentals=int(B * N * D),
        bytes_accessed=int(B * N * D * (in_isz + out_isz)
                           + B * D * D * m_isz + D * D * in_isz + D * 4),
    )
    y = pl.pallas_call(
        functools.partial(_output_kernel, approx=approx_reciprocal,
                          mxu_dtype=mxu_dtype),
        out_shape=jax.ShapeDtypeStruct((B, N, D), x.dtype),
        grid_spec=pltpu.PrefetchScalarGridSpec(
            num_scalar_prefetch=0,
            grid=(B, n_tiles),
            in_specs=[
                pl.BlockSpec((1, bn, D), lambda b, n: (b, n, 0)),
                pl.BlockSpec((1, D, D), lambda b, n: (b, 0, 0)),
                pl.BlockSpec((D, D), lambda b, n: (0, 0)),
                pl.BlockSpec((1, D), lambda b, n: (0, 0)),
            ],
            out_specs=pl.BlockSpec((1, bn, D), lambda b, n: (b, n, 0)),
        ),
        compiler_params=pltpu.CompilerParams(
            dimension_semantics=("parallel", "parallel"),
            vmem_limit_bytes=vmem_limit_bytes),
        cost_estimate=out_cost,
    )(x_in, m_fused, wv_t, bout2)
    return y


def linear_attention_ref(x, w_qkv, w_out, b_out):
    """Pure-JAX reference mirroring the PyTorch forward exactly."""
    D = x.shape[-1]
    scale = float(D) ** (-0.5)
    hp = jax.lax.Precision.HIGHEST
    qkv = jnp.einsum('bnd,ed->bne', x, w_qkv, precision=hp)   # Linear, no bias
    q, k, v = jnp.split(qkv, 3, axis=-1)
    q = jax.nn.softmax(q, axis=-1) * scale
    k = jax.nn.softmax(k, axis=-1)
    v = jax.nn.softmax(v, axis=-1)
    context = jnp.einsum('bnd,bne->bde', q, k, precision=hp)
    out = jnp.einsum('bde,bne->bnd', context, v, precision=hp)
    return jnp.einsum('bnd,ed->bne', out, w_out, precision=hp) + b_out


if __name__ == "__main__":
    # N = 200 with block_n = 64 exercises the cdiv grid + masked partial last
    # tile (200 = 3*64 + 8) of the two-pass path; the fused path loads the
    # whole (N, D) slab.
    B, N, D = 2, 200, 32

    key = jax.random.PRNGKey(0)
    kx, kqkv, kwo, kbo = jax.random.split(key, 4)

    x = jax.random.normal(kx, (B, N, D), dtype=jnp.float32)

    # nn.Linear default init: U(-1/sqrt(fan_in), 1/sqrt(fan_in))
    bound = 1.0 / (D ** 0.5)
    w_qkv = jax.random.uniform(kqkv, (3 * D, D), jnp.float32, -bound, bound)
    w_out = jax.random.uniform(kwo, (D, D), jnp.float32, -bound, bound)
    b_out = jax.random.uniform(kbo, (D,), jnp.float32, -bound, bound)

    y_ref = linear_attention_ref(x, w_qkv, w_out, b_out)

    # 1) Two-pass, exact f32: tight check of tiled accumulation + masking.
    y1 = jax.block_until_ready(
        linear_attention(x, w_qkv, w_out, b_out, block_n=64, fused=False,
                         mxu_dtype=None, approx_reciprocal=False))
    assert y1.shape == (B, N, D)
    assert jnp.allclose(y1, y_ref, atol=5e-5, rtol=5e-5)

    # 2) Fused single-call, exact f32: tight check of the fused kernel.
    y2 = jax.block_until_ready(
        linear_attention(x, w_qkv, w_out, b_out, fused=True,
                         mxu_dtype=None, approx_reciprocal=False))
    assert jnp.allclose(y2, y_ref, atol=5e-5, rtol=5e-5)

    # 3) Two-pass default perf path (bf16 MXU operands + EUP reciprocal).
    y3 = jax.block_until_ready(
        linear_attention(x, w_qkv, w_out, b_out, block_n=64, fused=False))
    assert jnp.allclose(y3, y_ref, atol=2e-2, rtol=2e-2)

    # 4) Auto path (picks the fused kernel at these shapes), default bf16.
    y4 = jax.block_until_ready(linear_attention(x, w_qkv, w_out, b_out))
    assert jnp.allclose(y4, y_ref, atol=2e-2, rtol=2e-2)

    print("KERNEL_OK")
</pallas_src>

<mosaic_0001>
module attributes {stable_mosaic.version = 11 : i64} {
  func.func @_context_kernel(%arg0: i32, %arg1: i32, %arg2: memref<1x64x32xf32, #tpu.memory_space<vmem>>, %arg3: memref<32x32xf32, #tpu.memory_space<vmem>>, %arg4: memref<32x32xf32, #tpu.memory_space<vmem>>, %arg5: memref<32x32xf32, #tpu.memory_space<vmem>>, %arg6: memref<1x32x32xf32, #tpu.memory_space<vmem>>, %arg7: memref<32x32xf32, #tpu.memory_space<vmem>>) attributes {dimension_semantics = [#tpu.dimension_semantics<parallel>, #tpu.dimension_semantics<arbitrary>], iteration_bounds = array<i64: 2, 4>, scalar_prefetch = 0 : i64, scratch_operands = 1 : i64, tpu.core_type = #tpu.core_type<tc>, window_params = [{transform_indices = @transform_0, window_bounds = array<i64: 1, 64, 32>}, {pipeline_mode = #tpu.pipeline_mode<synchronous>, transform_indices = @transform_1, window_bounds = array<i64: 32, 32>}, {pipeline_mode = #tpu.pipeline_mode<synchronous>, transform_indices = @transform_2, window_bounds = array<i64: 32, 32>}, {pipeline_mode = #tpu.pipeline_mode<synchronous>, transform_indices = @transform_3, window_bounds = array<i64: 32, 32>}, {transform_indices = @transform_4, window_bounds = array<i64: 1, 32, 32>}]} {
    %c0_i32 = arith.constant 0 : i32
    %0 = arith.cmpi eq, %arg1, %c0_i32 : i32
    %1 = arith.extui %0 : i1 to i32
    %c0_i32_0 = arith.constant 0 : i32
    %2 = arith.cmpi ne, %1, %c0_i32_0 : i32
    scf.if %2 {
      %cst_22 = arith.constant 0.000000e+00 : f32
      %52 = vector.broadcast %cst_22 : f32 to vector<32x32xf32>
      %c0_23 = arith.constant 0 : index
      %c0_24 = arith.constant 0 : index
      %53 = vector.load %arg7[%c0_23, %c0_24] : memref<32x32xf32, #tpu.memory_space<vmem>>, vector<32x32xf32>
      tpu.vector_store %arg7[%c0_23, %c0_24], %52 {strides = array<i32>} : memref<32x32xf32, #tpu.memory_space<vmem>>, vector<32x32xf32>,
    } else {
    }
    %c0 = arith.constant 0 : index
    %c0_1 = arith.constant 0 : index
    %c0_2 = arith.constant 0 : index
    %3 = vector.load %arg2[%c0, %c0_1, %c0_2] : memref<1x64x32xf32, #tpu.memory_space<vmem>>, vector<1x64x32xf32>
    %4 = vector.shape_cast %3 : vector<1x64x32xf32> to vector<64x32xf32>
    %5 = tpu.iota {dimensions = array<i32: 0>} : vector<64x1xi32>
    %c64_i32 = arith.constant 64 : i32
    %6 = arith.muli %arg1, %c64_i32 : i32
    %7 = vector.broadcast %6 : i32 to vector<64x1xi32>
    %8 = arith.addi %5, %7 : vector<64x1xi32>
    %c200_i32 = arith.constant 200 : i32
    %9 = vector.broadcast %c200_i32 : i32 to vector<64x1xi32>
    %10 = arith.cmpi slt, %8, %9 : vector<64x1xi32>
    %cst = arith.constant 0.000000e+00 : f32
    %11 = vector.broadcast %cst : f32 to vector<64x32xf32>
    %12 = vector.shape_cast %10 : vector<64x1xi1> to vector<64x1xi1>
    %13 = vector.broadcast %12 : vector<64x1xi1> to vector<64x32xi1>
    %14 = arith.select %13, %4, %11 : vector<64x32xi1>, vector<64x32xf32>
    %c0_3 = arith.constant 0 : index
    %c0_4 = arith.constant 0 : index
    %15 = vector.load %arg3[%c0_3, %c0_4] : memref<32x32xf32, #tpu.memory_space<vmem>>, vector<32x32xf32>
    %cst_5 = arith.constant dense<0.000000e+00> : vector<64x32xf32>
    %16 = tpu.matmul %14, %15, %cst_5 {dimension_numbers = #tpu.dot_dimension_numbers<[1], [0], [0], [1], [0, 0, 1, 1], [], []>} : vector<64x32xf32>, vector<32x32xf32>, vector<64x32xf32> -> vector<64x32xf32>
    %cst_6 = arith.constant dense<0xFF800000> : vector<64xf32>
    %17 = vector.multi_reduction <maximumf>, %16, %cst_6 [1] : vector<64x32xf32> to vector<64xf32>
    %18 = vector.shape_cast %17 : vector<64xf32> to vector<64x1xf32>
    %19 = vector.broadcast %18 : vector<64x1xf32> to vector<64x32xf32>
    %20 = arith.subf %16, %19 : vector<64x32xf32>
    %21 = math.exp %20 : vector<64x32xf32>
    %cst_7 = arith.constant dense<0.000000e+00> : vector<64xf32>
    %22 = vector.multi_reduction <add>, %21, %cst_7 [1] : vector<64x32xf32> to vector<64xf32>
    %23 = vector.shape_cast %22 : vector<64xf32> to vector<64x1xf32>
    %cst_8 = arith.constant 1.000000e+00 : f32
    %24 = vector.broadcast %cst_8 : f32 to vector<64x1xf32>
    %25 = arith.divf %24, %23 : vector<64x1xf32>
    %26 = vector.broadcast %25 : vector<64x1xf32> to vector<64x32xf32>
    %27 = arith.mulf %21, %26 : vector<64x32xf32>
    %c0_9 = arith.constant 0 : index
    %c0_10 = arith.constant 0 : index
    %28 = vector.load %arg4[%c0_9, %c0_10] : memref<32x32xf32, #tpu.memory_space<vmem>>, vector<32x32xf32>
    %cst_11 = arith.constant dense<0.000000e+00> : vector<64x32xf32>
    %29 = tpu.matmul %14, %28, %cst_11 {dimension_numbers = #tpu.dot_dimension_numbers<[1], [0], [0], [1], [0, 0, 1, 1], [], []>} : vector<64x32xf32>, vector<32x32xf32>, vector<64x32xf32> -> vector<64x32xf32>
    %cst_12 = arith.constant dense<0xFF800000> : vector<64xf32>
    %30 = vector.multi_reduction <maximumf>, %29, %cst_12 [1] : vector<64x32xf32> to vector<64xf32>
    %31 = vector.shape_cast %30 : vector<64xf32> to vector<64x1xf32>
    %32 = vector.broadcast %31 : vector<64x1xf32> to vector<64x32xf32>
    %33 = arith.subf %29, %32 : vector<64x32xf32>
    %34 = math.exp %33 : vector<64x32xf32>
    %cst_13 = arith.constant dense<0.000000e+00> : vector<64xf32>
    %35 = vector.multi_reduction <add>, %34, %cst_13 [1] : vector<64x32xf32> to vector<64xf32>
    %36 = vector.shape_cast %35 : vector<64xf32> to vector<64x1xf32>
    %cst_14 = arith.constant 1.000000e+00 : f32
    %37 = vector.broadcast %cst_14 : f32 to vector<64x1xf32>
    %38 = arith.divf %37, %36 : vector<64x1xf32>
    %39 = vector.broadcast %38 : vector<64x1xf32> to vector<64x32xf32>
    %40 = arith.mulf %34, %39 : vector<64x32xf32>
    %cst_15 = arith.constant 0.000000e+00 : f32
    %41 = vector.shape_cast %10 : vector<64x1xi1> to vector<64x1xi1>
    %42 = vector.broadcast %41 : vector<64x1xi1> to vector<64x32xi1>
    %43 = vector.broadcast %cst_15 : f32 to vector<64x32xf32>
    %44 = arith.select %42, %40, %43 : vector<64x32xi1>, vector<64x32xf32>
    %c0_16 = arith.constant 0 : index
    %c0_17 = arith.constant 0 : index
    %45 = vector.load %arg7[%c0_16, %c0_17] : memref<32x32xf32, #tpu.memory_space<vmem>>, vector<32x32xf32>
    %cst_18 = arith.constant dense<0.000000e+00> : vector<32x32xf32>
    %46 = tpu.matmul %27, %44, %cst_18 {dimension_numbers = #tpu.dot_dimension_numbers<[0], [0], [1], [1], [0, 1, 1, 1], [], []>} : vector<64x32xf32>, vector<64x32xf32>, vector<32x32xf32> -> vector<32x32xf32>
    %47 = arith.addf %45, %46 : vector<32x32xf32>
    %c0_19 = arith.constant 0 : index
    %c0_20 = arith.constant 0 : index
    %48 = vector.load %arg7[%c0_19, %c0_20] : memref<32x32xf32, #tpu.memory_space<vmem>>, vector<32x32xf32>
    tpu.vector_store %arg7[%c0_19, %c0_20], %47 {strides = array<i32>} : memref<32x32xf32, #tpu.memory_space<vmem>>, vector<32x32xf32>,
    %c3_i32 = arith.constant 3 : i32
    %49 = arith.cmpi eq, %arg1, %c3_i32 : i32
    %50 = arith.extui %49 : i1 to i32
    %c0_i32_21 = arith.constant 0 : i32
    %51 = arith.cmpi ne, %50, %c0_i32_21 : i32
    scf.if %51 {
      %c0_22 = arith.constant 0 : index
      %c0_23 = arith.constant 0 : index
      %52 = vector.load %arg7[%c0_22, %c0_23] : memref<32x32xf32, #tpu.memory_space<vmem>>, vector<32x32xf32>
      %c0_24 = arith.constant 0 : index
      %c0_25 = arith.constant 0 : index
      %53 = vector.load %arg5[%c0_24, %c0_25] : memref<32x32xf32, #tpu.memory_space<vmem>>, vector<32x32xf32>
      %cst_26 = arith.constant dense<0.000000e+00> : vector<32x32xf32>
      %54 = tpu.matmul %52, %53, %cst_26 {dimension_numbers = #tpu.dot_dimension_numbers<[0], [0], [1], [1], [0, 1, 1, 1], [], []>} : vector<32x32xf32>, vector<32x32xf32>, vector<32x32xf32> -> vector<32x32xf32>
      %c0_27 = arith.constant 0 : index
      %c0_28 = arith.constant 0 : index
      %c0_29 = arith.constant 0 : index
      %55 = vector.load %arg6[%c0_27, %c0_28, %c0_29] : memref<1x32x32xf32, #tpu.memory_space<vmem>>, vector<1x32x32xf32>
      %56 = vector.shape_cast %55 : vector<1x32x32xf32> to vector<32x32xf32>
      %57 = vector.shape_cast %54 : vector<32x32xf32> to vector<1x32x32xf32>
      tpu.vector_store %arg6[%c0_27, %c0_28, %c0_29], %57 {strides = array<i32>} : memref<1x32x32xf32, #tpu.memory_space<vmem>>, vector<1x32x32xf32>,
    } else {
    }
    return
  }
  func.func @transform_0(%arg0: i32, %arg1: i32) -> (i32, i32, i32) {
    %c0_i32 = arith.constant 0 : i32
    %c0_i32_0 = arith.constant 0 : i32
    return %arg0, %arg1, %c0_i32 : i32, i32, i32
  }
  func.func @transform_1(%arg0: i32, %arg1: i32) -> (i32, i32) {
    %c0_i32 = arith.constant 0 : i32
    %c0_i32_0 = arith.constant 0 : i32
    %c0_i32_1 = arith.constant 0 : i32
    return %c0_i32, %c0_i32_0 : i32, i32
  }
  func.func @transform_2(%arg0: i32, %arg1: i32) -> (i32, i32) {
    %c0_i32 = arith.constant 0 : i32
    %c0_i32_0 = arith.constant 0 : i32
    %c0_i32_1 = arith.constant 0 : i32
    return %c0_i32, %c0_i32_0 : i32, i32
  }
  func.func @transform_3(%arg0: i32, %arg1: i32) -> (i32, i32) {
    %c0_i32 = arith.constant 0 : i32
    %c0_i32_0 = arith.constant 0 : i32
    %c0_i32_1 = arith.constant 0 : i32
    return %c0_i32, %c0_i32_0 : i32, i32
  }
  func.func @transform_4(%arg0: i32, %arg1: i32) -> (i32, i32, i32) {
    %c0_i32 = arith.constant 0 : i32
    %c0_i32_0 = arith.constant 0 : i32
    %c0_i32_1 = arith.constant 0 : i32
    return %arg0, %c0_i32, %c0_i32_0 : i32, i32, i32
  }
}

</mosaic_0001>

<bundles_post_ra>
// kernel: tpu_custom_call.1
= control target key start
LH: loop header
LB: loop body
LE: loop exit
PB: predicated region body
PF: predicated region fallthrough
CT: control target
= control target key end

     0   :  { %9 = vsyncpa [#allocation4], 0  ;;  %s2042_s0 = inlined_call_operand.vmem [shape: f32[2,200,32], index: 0, kind: input, shape index: {}]   ;;  %s2043_s1 = inlined_call_operand.vmem [shape: f32[32,32], index: 1, kind: input, shape index: {}]   ;;  %s2044_s2 = inlined_call_operand.vmem [shape: f32[32,32], index: 2, kind: input, shape index: {}]   ;;  %s2045_s3 = inlined_call_operand.vmem [shape: f32[32,32], index: 3, kind: input, shape index: {}]   ;;  %s2046_s4 = inlined_call_operand.hbm [shape: f32[2,32,32], index: 4, kind: output, shape index: {}]  }
   0x1   :  { %11 = vsyncpa [#allocation4 + $0x1], 0  ;;  %s1630_s15 = smov 0   ;;  %s1632_s16 = smov 0  }
   0x2   :  { %s1634_s17 = smov 0   ;;  %s1636_s18 = smov 0  }
   0x3   :  { %s1638_s19 = smov 0   ;;  %s1640_s20 = smov 0  }
   0x4   :  { %s1642_s21 = smov 0   ;;  %s1644_s22 = smov 0  }
   0x5 LB: > { %s1135_s23 = sadd.s32 4294967295, %s1599_s22   ;;  %s1136_s24 = sadd.s32 4294967294, %s1599_s22   ;;  %s1599_s22 = sphi %s1644_s22, %s17_s22   ;;  %s1595_s21 = sphi %s1642_s21, %s2057_s21   ;;  %s1591_s20 = sphi %s1640_s20, %s2056_s20   ;;  %s1587_s19 = sphi %s1638_s19, %s2055_s19   ;;  %s1583_s18 = sphi %s1636_s18, %s2054_s18   ;;  %s1579_s17 = sphi %s1634_s17, %s2053_s17   ;;  %s1575_s16 = sphi %s1632_s16, %s2052_s16   ;;  %s1571_s15 = sphi %s1630_s15, %s2051_s15  }
   0x6   : > { %s26_s25 = sadd.s32 1, %s1591_s20  ;;  %s29_s26 = sadd.s32 1, %s1595_s21 }
   0x7   : > { %p27_p0 = scmp.ge.s32.totalorder %s26_s25, 4  ;;  %p137_p1 = scmp.ne.s32.totalorder %s1579_s17, %s1575_s16 }
   0x8   : > { %p138_p2 = scmp.eq.s32.totalorder %s1135_s23, 7  ;;  %p143_p4 = scmp.ne.s32.totalorder %s1575_s16, %s1571_s15 }
   0x9   : > { %s2059_s25 = smov (%p27_p0, %s26_s25), 0  ;;  %s2061_s26 = smov (!%p27_p0, %s29_s26), %s1595_s21 }
   0xa   : > { %p1679_p3 = por %p138_p2, %p137_p1  ;;  %p31_p5 = scmp.ge.s32.totalorder %s2061_s26, 2 }
   0xb   : > { %p144_p6 = scmp.eq.s32.totalorder %s1136_s24, 7  ;;  %p1139_p7 = scmp.ge.s32.totalorder %s1599_s22, 1 }
   0xc   : > { %p192_p8 = scmp.lt.s32.totalorder %s1599_s22, 9  ;;  %s2063_s26 = smov (%p31_p5, %s2061_s26), 0 }
   0xd   : > { %p1689_p9 = por %p144_p6, %p143_p4  ;;  %s124_s29 = ssub.s32 %s1595_s21, %s2063_s26 }
   0xe   : > { %p193_p10 = pnand %p1139_p7, %p192_p8  ;;  %s127_s30 = sadd.s32 1, %s1579_s17 }
   0xf   : > { %p125_p11 = scmp.eq.s32.totalorder %s124_s29, 0  ;;  %s223_s6 = sand.u32 (!%p193_p10), 1, %s1575_s16  }
  0x10   : > { %196 = sbr.rel (%p193_p10) target bundleno = 1305 (0x519), region = 36  ;;  %s1141_s7 = sshll.u32 (!%p193_p10), %s1583_s18, 3 }
  0x11   : > { %s1697_s5 = scalar_select %p125_p11, %s1579_s17, %s127_s30  }
  0x12   : > { %s1140_s8 = sshll.u32 (!%p193_p10), %s223_s6, 5  ;;  %p231_p12 = scmp.lt.s32.totalorder (!%p193_p10), %s1587_s19, 1 }
  0x13   : > { %p233_p13 = scmp.lt.s32.totalorder (!%p193_p10), %s1141_s7, 24  ;;  %s1710_s24 = scalar_lea.vmem (!%p193_p10), [#allocation3], %s1140_s8 }
  0x14   : > { %p1143_p0 = scmp.ne.s32.totalorder (!%p193_p10), %s1583_s18, 0 }
  0x17   : > { %s232_s9 = scalar_select %p231_p12, %s1587_s19, 1 }
  0x18   : > { %s2065_s7 = smov (!%p233_p13, %s1141_s7), 24  ;;  %247 = sbr.rel (%p1143_p0) target bundleno = 31 (0x1f), region = 40 }
  0x19   : > { %s1364_s10 = smul.u32 25, %s232_s9  ;;  %vm248_vm0 = vcmask (!%p1143_p0), 261120   ;;  %v1601_v0 = vmov (!%p1143_p0), 0.0  }
  0x1a   : > { %249 = vst.msk [vmem:[#allocation2] sm:$0xff] (!%p1143_p0), %vm248_vm0, %v1601_v0  ;;  %250 = vst.msk [vmem:[#allocation2 + $0x8] sm:$0xff] (!%p1143_p0), %vm248_vm0, %v1601_v0 }
  0x1b   : > { %s236_s11 = sadd.s32 %s1364_s10, %s2065_s7  ;;  %251 = vst.msk [vmem:[#allocation2 + $0x10] sm:$0xff] (!%p1143_p0), %vm248_vm0, %v1601_v0  ;;  %252 = vst.msk [vmem:[#allocation2 + $0x18] sm:$0xff] (!%p1143_p0), %vm248_vm0, %v1601_v0 }
  0x1c   : > { %s1142_s12 = sshll.u32 %s236_s11, 3 }
  0x1d   : > { %s1708_s23 = scalar_lea.vmem %s2042_s0, %s1142_s12 }
  0x1f PF: > { %v312_v1 = vld [vmem:[%s2043_s1] sm:$0xff]  ;;  %v313_v2 = vld [vmem:[%s2043_s1 + $0x8] sm:$0xff]  ;;  %v314_v3 = vld [vmem:[%s2043_s1 + $0x10] sm:$0xff]  ;;  %v261_v4 = vlaneseq  ;;  %s1144_s11 = sshll.u32 %s1583_s18, 6  ;;  %vm316_vm1 = vcmask 261120   ;;  %vm791_vm14 = vcmask 523264  }
  0x20   : > { %v1304_v5 = vpack.c.bf16 %v313_v2, %v312_v1  ;;  %v315_v6 = vld [vmem:[%s2043_s1 + $0x18] sm:$0xff]  ;;  %v271_v7 = vstv %s1144_s11  ;;  %v542_v10 = vld [vmem:[%s2044_s2] sm:$0xff]  ;;  %v543_v11 = vld [vmem:[%s2044_s2 + $0x8] sm:$0xff]  ;;  %p1173_p1 = scmp.ne.s32.totalorder %s1583_s18, 3 }
  0x21   : > { %v1308_v8 = vpack.c.bf16 %v315_v6, %v314_v3  ;;  %v262_v9 = vshrl.u32 %v261_v4, 7  ;;  %v253_v12 = vld [vmem:[%s1708_s23] sm:$0xff]  ;;  %v1312_v19 = vpack.c.bf16 %v543_v11, %v542_v10  ;;  %v254_v22 = vld [vmem:[%s1708_s23 + $0x8] sm:$0xff]  ;;  %v255_v23 = vld [vmem:[%s1708_s23 + $0x10] sm:$0xff] }
  0x22   : > { %1305 = vmatprep.subr.bf16.mxu0 %v1304_v5  ;;  %v544_v29 = vld [vmem:[%s2044_s2 + $0x10] sm:$0xff]  ;;  %v545_v30 = vld [vmem:[%s2044_s2 + $0x18] sm:$0xff]  ;;  %v257_v36 = vld [vmem:[%s1708_s23 + $0x20] sm:$0xff] }
  0x23   : > { %1307 = vmatpush3.bf16.msra.mxu0 %v1304_v5  ;;  %v263_v13 = vadd.s32 8, %v262_v9  ;;  %v272_v14 = vadd.s32 %v271_v7, %v262_v9  ;;  %v264_v15 = vadd.s32 16, %v262_v9  ;;  %v265_v16 = vadd.s32 24, %v262_v9  ;;  %1313 = vmatprep.subr.bf16.mxu1 %v1312_v19  ;;  %v256_v34 = vld [vmem:[%s1708_s23 + $0x18] sm:$0xff]  ;;  %v258_v41 = vld [vmem:[%s1708_s23 + $0x28] sm:$0xff]  ;;  %v259_v43 = vld [vmem:[%s1708_s23 + $0x30] sm:$0xff] }
  0x24   : > { %1309 = vmatprep.subr.bf16.mxu0 %v1308_v8  ;;  %v266_v17 = vadd.s32 32, %v262_v9  ;;  %v267_v18 = vadd.s32 40, %v262_v9  ;;  %v268_v20 = vadd.s32 48, %v262_v9  ;;  %1315 = vmatpush3.bf16.msra.mxu1 %v1312_v19  ;;  %v269_v35 = vadd.s32 56, %v262_v9  ;;  %v260_v46 = vld [vmem:[%s1708_s23 + $0x38] sm:$0xff] }
  0x25   : > { %v273_v21 = vadd.s32 %v271_v7, %v263_v13  ;;  %vm280_vm2 = vcmp.lt.s32.totalorder %v272_v14, 200  ;;  %v1735_v24 = vadd.s32 %v271_v7, %v264_v15  ;;  %v1737_v25 = vadd.s32 %v271_v7, %v265_v16 }
  0x26   : > { %v304_v26 = vsel %vm280_vm2, %v253_v12, 0.0  ;;  %v1740_v27 = vadd.s32 %v271_v7, %v266_v17  ;;  %v1744_v28 = vadd.s32 %v271_v7, %v267_v18  ;;  %v1764_v37 = vadd.s32 %v271_v7, %v268_v20 }
  0x27   : > { %1311 = vmatpush3.bf16.msra.mxu0 %v1308_v8  ;;  %vm281_vm3 = vcmp.lt.s32.totalorder %v273_v21, 200  ;;  %1236 = vmatprep.mubr.msk.f32.mxu0 %vm316_vm1, %v304_v26  ;;  %vm282_vm4 = vcmp.lt.s32.totalorder %v1735_v24, 200  ;;  %vm283_vm6 = vcmp.lt.s32.totalorder %v1737_v25, 200  ;;  %v1316_v38 = vpack.c.bf16 %v545_v30, %v544_v29 }
  0x28   : > { %vm1753_vm5 = vmpackc.low %vm281_vm3, %vm280_vm2  ;;  %v305_v32 = vsel %vm281_vm3, %v254_v22, 0.0  ;;  %v306_v33 = vsel %vm282_vm4, %v255_v23, 0.0  ;;  %1256 = vmatprep.mubr.msk.f32.mxu1 %vm316_vm1, %v304_v26  ;;  %vm284_vm7 = vcmp.lt.s32.totalorder %v1740_v27, 200  ;;  %v307_v39 = vsel %vm283_vm6, %v256_v34, 0.0 }
  0x29   : > { %v308_v40 = vsel %vm284_vm7, %v257_v36, 0.0  ;;  %vm285_vm8 = vcmp.lt.s32.totalorder %v1744_v28, 200  ;;  %v1774_v42 = vadd.s32 %v271_v7, %v269_v35  ;;  %1317 = vmatprep.subr.bf16.mxu1 %v1316_v38  ;;  %vm286_vm9 = vcmp.lt.s32.totalorder %v1764_v37, 200  ;;  %vm1327_vm11 = vmpackc.low %vm283_vm6, %vm282_vm4 }
  0x2a   : > { %1237 = vmatmul.mubr.msk.f32.vlgmr.msra.gmra.mrb[0].mxu0 %vm316_vm1, %v305_v32  ;;  %1319 = vmatpush3.bf16.msra.mxu1 %v1316_v38  ;;  %v309_v44 = vsel %vm285_vm8, %v258_v41, 0.0  ;;  %v310_v45 = vsel %vm286_vm9, %v259_v43, 0.0  ;;  %vm1333_vm12 = vmpackc.low %vm285_vm8, %vm284_vm7 }
  0x2b   : > { %1239 = vmatprep.mubr.msk.f32.mxu0 %vm316_vm1, %v306_v33  ;;  %vm287_vm10 = vcmp.lt.s32.totalorder %v1774_v42, 200 }
  0x2c   : > { %v311_v47 = vsel %vm287_vm10, %v260_v46, 0.0  ;;  %vm1339_vm13 = vmpackc.low %vm287_vm10, %vm286_vm9 }
  0x2d   : > { %1257 = vmatmul.mubr.msk.f32.vlgmr.msra.gmra.mrb[0].mxu1 %vm316_vm1, %v305_v32 }
  0x2e   : > { %1240 = vmatmul.mubr.msk.f32.gmra.mrb[2].mxu0 %vm316_vm1, %v307_v39  ;;  %1259 = vmatprep.mubr.msk.f32.mxu1 %vm316_vm1, %v306_v33 }
  0x2f   : > { %1242 = vmatprep.mubr.msk.f32.mxu0 %vm316_vm1, %v308_v40 }
  0x31   : > { %1260 = vmatmul.mubr.msk.f32.gmra.mrb[2].mxu1 %vm316_vm1, %v307_v39 }
  0x32   : > { %1243 = vmatmul.mubr.msk.f32.gmra.mrb[4].mxu0 %vm316_vm1, %v309_v44  ;;  %1262 = vmatprep.mubr.msk.f32.mxu1 %vm316_vm1, %v308_v40 }
  0x33   : > { %1245 = vmatprep.mubr.msk.f32.mxu0 %vm316_vm1, %v310_v45 }
  0x35   : > { %1263 = vmatmul.mubr.msk.f32.gmra.mrb[4].mxu1 %vm316_vm1, %v309_v44 }
  0x36   : > { %1246 = vmatmul.mubr.msk.f32.gmra.mrb[6].mxu0 %vm316_vm1, %v311_v47  ;;  %1265 = vmatprep.mubr.msk.f32.mxu1 %vm316_vm1, %v310_v45 }
  0x39   : > { %1266 = vmatmul.mubr.msk.f32.gmra.mrb[6].mxu1 %vm316_vm1, %v311_v47 }
  0xfd   : > { %v1238_v48 = vpop.f32.mrb[0].mxu0 }
  0xfe   : > { %v407_v49 = vpop.f32.mrb[1].mxu0  ;;  %v449_v53 = vsel %vm316_vm1, %v1238_v48, -inf }
  0xff   : > { %v446_v50 = vsel %vm316_vm1, %v407_v49, -inf }
 0x100   : > { %447 = vmax.xlane.f32.xlu0 %v446_v50  ;;  %v1801_v55 = vpop.f32.mrb[0].mxu1 }
 0x101   : > { %v1241_v51 = vpop.f32.mrb[2].mxu0  ;;  %v1803_v56 = vpop.f32.mrb[1].mxu1  ;;  %v654_v9 = vsel %vm316_vm1, %v1801_v55, -inf }
 0x102   : > { %v417_v52 = vpop.f32.mrb[3].mxu0  ;;  %v455_v58 = vsel %vm316_vm1, %v1241_v51, -inf  ;;  %v651_v6 = vsel %vm316_vm1, %v1803_v56, -inf }
 0x103   : > { %v452_v54 = vsel %vm316_vm1, %v417_v52, -inf }
 0x104   : > { %450 = vmax.xlane.f32.xlu0 %v449_v53  ;;  %453 = vmax.xlane.f32.xlu1 %v452_v54  ;;  %v1807_v61 = vpop.f32.mrb[2].mxu1 }
 0x105   : > { %v1244_v57 = vpop.f32.mrb[4].mxu0  ;;  %v1809_v62 = vpop.f32.mrb[3].mxu1  ;;  %v660_v11 = vsel %vm316_vm1, %v1807_v61, -inf }
 0x106   : > { %v427_v59 = vpop.f32.mrb[5].mxu0  ;;  %v461_v0 = vsel %vm316_vm1, %v1244_v57, -inf  ;;  %v657_v10 = vsel %vm316_vm1, %v1809_v62, -inf }
 0x107   : > { %v458_v60 = vsel %vm316_vm1, %v427_v59, -inf }
 0x108   : > { %456 = vmax.xlane.f32.xlu1 %v455_v58  ;;  %459 = vmax.xlane.f32.xlu0 %v458_v60  ;;  %v1815_v3 = vpop.f32.mrb[4].mxu1 }
 0x109   : > { %v1811_v63 = vpop.f32.mrb[6].mxu0  ;;  %v1817_v4 = vpop.f32.mrb[5].mxu1  ;;  %v666_v13 = vsel %vm316_vm1, %v1815_v3, -inf }
 0x10a   : > { %v437_v1 = vpop.f32.mrb[7].mxu0  ;;  %v467_v5 = vsel %vm316_vm1, %v1811_v63, -inf  ;;  %v663_v12 = vsel %vm316_vm1, %v1817_v4, -inf }
 0x10b   : > { %v464_v2 = vsel %vm316_vm1, %v437_v1, -inf }
 0x10c   : > { %462 = vmax.xlane.f32.xlu1 %v461_v0  ;;  %465 = vmax.xlane.f32.xlu0 %v464_v2  ;;  %v1823_v7 = vpop.f32.mrb[6].mxu1 }
 0x10d   : > { %v1825_v8 = vpop.f32.mrb[7].mxu1  ;;  %v672_v15 = vsel %vm316_vm1, %v1823_v7, -inf }
 0x10e   : > { %v669_v14 = vsel %vm316_vm1, %v1825_v8, -inf }
 0x110   : > { %468 = vmax.xlane.f32.xlu1 %v467_v5  ;;  %652 = vmax.xlane.f32.xlu0 %v651_v6 }
 0x114   : > { %655 = vmax.xlane.f32.xlu1 %v654_v9  ;;  %658 = vmax.xlane.f32.xlu0 %v657_v10 }
 0x118   : > { %661 = vmax.xlane.f32.xlu1 %v660_v11  ;;  %664 = vmax.xlane.f32.xlu0 %v663_v12 }
 0x11c   : > { %667 = vmax.xlane.f32.xlu1 %v666_v13  ;;  %670 = vmax.xlane.f32.xlu0 %v669_v14 }
 0x120   : > { %673 = vmax.xlane.f32.xlu1 %v672_v15 }
 0x18d   : > { %v448_v16 = vpop.xlane.xlu0 %447 }
 0x18e   : > { %v470_v17 = vsub.f32 %v407_v49, %v448_v16 }
 0x190   : > { %v478_v18 = vmul.f32 1.442695, %v470_v17 }
 0x191   : > { %v451_v19 = vpop.xlane.xlu0 %450  ;;  %v454_v20 = vpop.xlane.xlu1 %453 }
 0x192   : > { %1441 = vpow2.f32 %v478_v18  ;;  %v471_v21 = vsub.f32 %v1238_v48, %v451_v19  ;;  %v472_v22 = vsub.f32 %v417_v52, %v454_v20 }
 0x194   : > { %v480_v23 = vmul.f32 1.442695, %v471_v21  ;;  %v482_v26 = vmul.f32 1.442695, %v472_v22 }
 0x195   : > { %v457_v29 = vpop.xlane.xlu1 %456  ;;  %v460_v30 = vpop.xlane.xlu0 %459 }
 0x196   : > { %1443 = vpow2.f32 %v480_v23  ;;  %v473_v32 = vsub.f32 %v1241_v51, %v457_v29  ;;  %v474_v33 = vsub.f32 %v427_v59, %v460_v30 }
 0x197   : > { %1445 = vpow2.f32 %v482_v26 }
 0x198   : > { %v484_v34 = vmul.f32 1.442695, %v473_v32  ;;  %v486_v35 = vmul.f32 1.442695, %v474_v33 }
 0x199   : > { %v463_v36 = vpop.xlane.xlu1 %462  ;;  %v466_v38 = vpop.xlane.xlu0 %465 }
 0x19a   : > { %1447 = vpow2.f32 %v484_v34  ;;  %v475_v39 = vsub.f32 %v1244_v57, %v463_v36  ;;  %v476_v40 = vsub.f32 %v437_v1, %v466_v38 }
 0x19b   : > { %1449 = vpow2.f32 %v486_v35 }
 0x19c   : > { %v1841_v41 = vpop.eup %1441  ;;  %v488_v43 = vmul.f32 1.442695, %v475_v39  ;;  %v490_v44 = vmul.f32 1.442695, %v476_v40 }
 0x19d   : > { %v469_v45 = vpop.xlane.xlu1 %468  ;;  %v653_v46 = vpop.xlane.xlu0 %652  ;;  %v494_v47 = vsel %vm316_vm1, %v1841_v41, 0.0 }
 0x19e   : > { %1451 = vpow2.f32 %v488_v43  ;;  %v477_v48 = vsub.f32 %v1811_v63, %v469_v45  ;;  %v675_v49 = vsub.f32 %v1803_v56, %v653_v46  ;;  %495 = vadd.xlane.f32.xlu0 %v494_v47 }
 0x19f   : > { %1453 = vpow2.f32 %v490_v44 }
 0x1a0   : > { %v1847_v50 = vpop.eup %1443  ;;  %v492_v51 = vmul.f32 1.442695, %v477_v48  ;;  %v683_v52 = vmul.f32 1.442695, %v675_v49 }
 0x1a1   : > { %v1849_v53 = vpop.eup %1445  ;;  %v656_v54 = vpop.xlane.xlu1 %655  ;;  %v497_v58 = vsel %vm316_vm1, %v1847_v50, 0.0 }
 0x1a2   : > { %v659_v57 = vpop.xlane.xlu0 %658  ;;  %1455 = vpow2.f32 %v492_v51  ;;  %v676_v59 = vsub.f32 %v1801_v55, %v656_v54  ;;  %498 = vadd.xlane.f32.xlu1 %v497_v58  ;;  %v500_v56 = vsel %vm316_vm1, %v1849_v53, 0.0 }
 0x1a3   : > { %v677_v60 = vsub.f32 %v1809_v62, %v659_v57  ;;  %1457 = vpow2.f32 %v683_v52  ;;  %501 = vadd.xlane.f32.xlu0 %v500_v56 }
 0x1a4   : > { %v1857_v63 = vpop.eup %1447  ;;  %v685_v0 = vmul.f32 1.442695, %v676_v59 }
 0x1a5   : > { %v687_v1 = vmul.f32 1.442695, %v677_v60  ;;  %v1859_v2 = vpop.eup %1449  ;;  %v662_v5 = vpop.xlane.xlu1 %661  ;;  %v503_v9 = vsel %vm316_vm1, %v1857_v63, 0.0 }
 0x1a6   : > { %v665_v6 = vpop.xlane.xlu0 %664  ;;  %1459 = vpow2.f32 %v685_v0  ;;  %v678_v55 = vsub.f32 %v1807_v61, %v662_v5  ;;  %504 = vadd.xlane.f32.xlu1 %v503_v9  ;;  %v506_v10 = vsel %vm316_vm1, %v1859_v2, 0.0 }
 0x1a7   : > { %v679_v62 = vsub.f32 %v1817_v4, %v665_v6  ;;  %1461 = vpow2.f32 %v687_v1  ;;  %507 = vadd.xlane.f32.xlu0 %v506_v10 }
 0x1a8   : > { %v1867_v11 = vpop.eup %1451  ;;  %v689_v12 = vmul.f32 1.442695, %v678_v55 }
 0x1a9   : > { %v691_v13 = vmul.f32 1.442695, %v679_v62  ;;  %v1869_v14 = vpop.eup %1453  ;;  %v668_v15 = vpop.xlane.xlu1 %667  ;;  %v509_v17 = vsel %vm316_vm1, %v1867_v11, 0.0 }
 0x1aa   : > { %v671_v16 = vpop.xlane.xlu0 %670  ;;  %1463 = vpow2.f32 %v689_v12  ;;  %v680_v61 = vsub.f32 %v1815_v3, %v668_v15  ;;  %510 = vadd.xlane.f32.xlu1 %v509_v17  ;;  %v512_v18 = vsel %vm316_vm1, %v1869_v14, 0.0 }
 0x1ab   : > { %v681_v4 = vsub.f32 %v1825_v8, %v671_v16  ;;  %1465 = vpow2.f32 %v691_v13  ;;  %513 = vadd.xlane.f32.xlu0 %v512_v18 }
 0x1ac   : > { %v1877_v19 = vpop.eup %1455  ;;  %v693_v20 = vmul.f32 1.442695, %v680_v61 }
 0x1ad   : > { %v695_v21 = vmul.f32 1.442695, %v681_v4  ;;  %v1879_v22 = vpop.eup %1457  ;;  %v674_v23 = vpop.xlane.xlu1 %673  ;;  %v515_v26 = vsel %vm316_vm1, %v1877_v19, 0.0 }
 0x1ae   : > { %1467 = vpow2.f32 %v693_v20  ;;  %v682_v3 = vsub.f32 %v1823_v7, %v674_v23  ;;  %516 = vadd.xlane.f32.xlu1 %v515_v26  ;;  %v699_v8 = vsel %vm316_vm1, %v1879_v22, 0.0 }
 0x1af   : > { %1469 = vpow2.f32 %v695_v21  ;;  %700 = vadd.xlane.f32.xlu0 %v699_v8 }
 0x1b0   : > { %v1886_v29 = vpop.eup %1459  ;;  %v697_v30 = vmul.f32 1.442695, %v682_v3 }
 0x1b1   : > { %v1888_v32 = vpop.eup %1461  ;;  %v702_v33 = vsel %vm316_vm1, %v1886_v29, 0.0 }
 0x1b2   : > { %1471 = vpow2.f32 %v697_v30  ;;  %703 = vadd.xlane.f32.xlu1 %v702_v33  ;;  %v705_v34 = vsel %vm316_vm1, %v1888_v32, 0.0 }
 0x1b3   : > { %706 = vadd.xlane.f32.xlu0 %v705_v34 }
 0x1b4   : > { %v1894_v7 = vpop.eup %1463 }
 0x1b5   : > { %v1896_v35 = vpop.eup %1465  ;;  %v708_v36 = vsel %vm316_vm1, %v1894_v7, 0.0 }
 0x1b6   : > { %709 = vadd.xlane.f32.xlu1 %v708_v36  ;;  %v711_v38 = vsel %vm316_vm1, %v1896_v35, 0.0 }
 0x1b7   : > { %712 = vadd.xlane.f32.xlu0 %v711_v38 }
 0x1b8   : > { %v1902_v39 = vpop.eup %1467 }
 0x1b9   : > { %v1904_v40 = vpop.eup %1469  ;;  %v714_v43 = vsel %vm316_vm1, %v1902_v39, 0.0 }
 0x1ba   : > { %715 = vadd.xlane.f32.xlu1 %v714_v43  ;;  %v717_v44 = vsel %vm316_vm1, %v1904_v40, 0.0 }
 0x1bb   : > { %718 = vadd.xlane.f32.xlu0 %v717_v44 }
 0x1bc   : > { %v1910_v45 = vpop.eup %1471 }
 0x1bd   : > { %v720_v46 = vsel %vm316_vm1, %v1910_v45, 0.0 }
 0x1be   : > { %721 = vadd.xlane.f32.xlu1 %v720_v46  ;;  %v757_v46 = vld [vmem:[#allocation2 + $0x10] sm:$0xff] }
 0x22b   : > { %v496_v47 = vpop.xlane.xlu0 %495 }
 0x22c   : > { %1473 = vrcp.f32 %v496_v47 }
 0x22f   : > { %v499_v48 = vpop.xlane.xlu1 %498 }
 0x230   : > { %1475 = vrcp.f32 %v499_v48  ;;  %v502_v49 = vpop.xlane.xlu0 %501 }
 0x231   : > { %1477 = vrcp.f32 %v502_v49 }
 0x233   : > { %v505_v51 = vpop.xlane.xlu1 %504 }
 0x234   : > { %v508_v52 = vpop.xlane.xlu0 %507  ;;  %1479 = vrcp.f32 %v505_v51 }
 0x235   : > { %1481 = vrcp.f32 %v508_v52 }
 0x236   : > { %v1474_v54 = vpop.eup %1473 }
 0x237   : > { %v511_v57 = vpop.xlane.xlu1 %510  ;;  %v534_v58 = vmul.f32 %v1474_v54, %v1841_v41  ;;  %v905_v54 = vld [vmem:[%s2045_s3] sm:$0xff] (!%p1173_p1) }
 0x238   : > { %v514_v59 = vpop.xlane.xlu0 %513  ;;  %1483 = vrcp.f32 %v511_v57  ;;  %v906_v57 = vld [vmem:[%s2045_s3 + $0x8] sm:$0xff] (!%p1173_p1) }
 0x239   : > { %759 = vxpose.xlu0.b32.start [1/8] (short) (narrow) %v534_v58, 32 }
 0x23a   : > { %v1476_v60 = vpop.eup %1475 }
 0x23b   : > { %v517_v56 = vpop.xlane.xlu1 %516  ;;  %v535_v0 = vmul.f32 %v1476_v60, %v1847_v50  ;;  %v1478_v1 = vpop.eup %1477  ;;  %v907_v60 = vld [vmem:[%s2045_s3 + $0x10] sm:$0xff] (!%p1173_p1) }
 0x23c   : > { %v701_v5 = vpop.xlane.xlu0 %700  ;;  %v536_v9 = vmul.f32 %v1478_v1, %v1849_v53 }
 0x23d   : > { %760 = vxpose.xlu0.b32.cont [2/8] (short) (narrow) %v535_v0, 32  ;;  %1485 = vrcp.f32 %v701_v5 }
 0x23e   : > { %v1480_v55 = vpop.eup %1479 }
 0x23f   : > { %v704_v6 = vpop.xlane.xlu1 %703  ;;  %v537_v10 = vmul.f32 %v1480_v55, %v1857_v63  ;;  %v1482_v12 = vpop.eup %1481 }
 0x240   : > { %1487 = vrcp.f32 %v704_v6  ;;  %v707_v62 = vpop.xlane.xlu0 %706  ;;  %v538_v16 = vmul.f32 %v1482_v12, %v1859_v2 }
 0x241   : > { %1489 = vrcp.f32 %v514_v59  ;;  %761 = vxpose.xlu0.b32.cont [3/8] (short) (narrow) %v536_v9, 32  ;;  %v1344_v59 = vpack.c.bf16 (!%p1173_p1), %v906_v57, %v905_v54 }
 0x242   : > { %1491 = vrcp.f32 %v707_v62  ;;  %v1484_v13 = vpop.eup %1483 }
 0x243   : > { %v710_v41 = vpop.xlane.xlu1 %709  ;;  %v539_v63 = vmul.f32 %v1484_v13, %v1867_v11 }
 0x244   : > { %1493 = vrcp.f32 %v710_v41  ;;  %v713_v50 = vpop.xlane.xlu0 %712 }
 0x245   : > { %1495 = vrcp.f32 %v517_v56  ;;  %762 = vxpose.xlu0.b32.cont [4/8] (short) (narrow) %v537_v10, 32  ;;  %v908_v56 = vld [vmem:[%s2045_s3 + $0x18] sm:$0xff] (!%p1173_p1) }
 0x246   : > { %1497 = vrcp.f32 %v713_v50  ;;  %v1348_v0 = vpack.c.bf16 (!%p1173_p1), %v908_v56, %v907_v60 }
 0x247   : > { %v716_v15 = vpop.xlane.xlu1 %715  ;;  %v1486_v53 = vpop.eup %1485 }
 0x248   : > { %1499 = vrcp.f32 %v716_v15  ;;  %v719_v17 = vpop.xlane.xlu0 %718  ;;  %v739_v20 = vmul.f32 %v1486_v53, %v1879_v22 }
 0x249   : > { %763 = vxpose.xlu0.b32.cont [5/8] (short) (narrow) %v538_v16, 32  ;;  %1501 = vrcp.f32 %v719_v17 }
 0x24a   : > { %v1488_v61 = vpop.eup %1487 }
 0x24b   : > { %v1490_v4 = vpop.eup %1489  ;;  %v722_v18 = vpop.xlane.xlu1 %721  ;;  %v740_v21 = vmul.f32 %v1488_v61, %v1886_v29 }
 0x24c   : > { %v1492_v23 = vpop.eup %1491  ;;  %1503 = vrcp.f32 %v722_v18  ;;  %v540_v8 = vmul.f32 %v1490_v4, %v1869_v14 }
 0x24d   : > { %764 = vxpose.xlu0.b32.cont [6/8] (short) (narrow) %v539_v63, 32  ;;  %v1320_v26 = vpack.c.bf16 %v740_v21, %v739_v20  ;;  %v741_v11 = vmul.f32 %v1492_v23, %v1888_v32 }
 0x24e   : > { %v1494_v3 = vpop.eup %1493 }
 0x24f   : > { %v1496_v2 = vpop.eup %1495  ;;  %1322 = vmatprep.subr.msk.bf16.mxu0 %vm1753_vm5, %v1320_v26  ;;  %1352 = vmatprep.subr.msk.bf16.mxu1 %vm1753_vm5, %v1320_v26  ;;  %v742_v22 = vmul.f32 %v1494_v3, %v1894_v7 }
 0x250   : > { %v1498_v30 = vpop.eup %1497  ;;  %1325 = vmatpush3.bf16.msk.msra.mxu0 %vm1753_vm5, %v1320_v26  ;;  %1356 = vmatpush3.bf16.msk.msra.mxu1 %vm1753_vm5, %v1320_v26  ;;  %v541_v14 = vmul.f32 %v1496_v2, %v1877_v19 }
 0x251   : > { %765 = vxpose.xlu0.b32.cont [7/8] (short) (narrow) %v540_v8, 32  ;;  %v1326_v29 = vpack.c.bf16 %v742_v22, %v741_v11  ;;  %v743_v32 = vmul.f32 %v1498_v30, %v1896_v35 }
 0x252   : > { %v1500_v33 = vpop.eup %1499 }
 0x253   : > { %1328 = vmatprep.subr.msk.bf16.mxu0 %vm1327_vm11, %v1326_v29  ;;  %1353 = vmatprep.subr.msk.bf16.mxu1 %vm1327_vm11, %v1326_v29  ;;  %v744_v34 = vmul.f32 %v1500_v33, %v1902_v39  ;;  %v1502_v7 = vpop.eup %1501  ;;  %v756_v39 = vld [vmem:[#allocation2 + $0x8] sm:$0xff] }
 0x254   : > { %1331 = vmatpush3.bf16.msk.msra.mxu0 %vm1327_vm11, %v1326_v29  ;;  %1357 = vmatpush3.bf16.msk.msra.mxu1 %vm1327_vm11, %v1326_v29  ;;  %v745_v31 = vmul.f32 %v1502_v7, %v1904_v40  ;;  %v755_v40 = vld [vmem:[#allocation2] sm:$0xff] }
 0x255   : > { %766 = vxpose.xlu0.b32.end [8/8] (short) (narrow) %v541_v14, 32  ;;  %v1332_v24 = vpack.c.bf16 %v744_v34, %v743_v32 }
 0x256   : > { %v1504_v25 = vpop.eup %1503 }
 0x257   : > { %1334 = vmatprep.subr.msk.bf16.mxu0 %vm1333_vm12, %v1332_v24  ;;  %1354 = vmatprep.subr.msk.bf16.mxu1 %vm1333_vm12, %v1332_v24  ;;  %v746_v19 = vmul.f32 %v1504_v25, %v1910_v45  ;;  %v758_v45 = vld [vmem:[#allocation2 + $0x18] sm:$0xff] }
 0x258   : > { %1337 = vmatpush3.bf16.msk.msra.mxu0 %vm1333_vm12, %v1332_v24  ;;  %1358 = vmatpush3.bf16.msk.msra.mxu1 %vm1333_vm12, %v1332_v24 }
 0x259   : > { %v1338_v27 = vpack.c.bf16 %v746_v19, %v745_v31 }
 0x25b   : > { %1340 = vmatprep.subr.msk.bf16.mxu0 %vm1339_vm13, %v1338_v27  ;;  %1355 = vmatprep.subr.msk.bf16.mxu1 %vm1339_vm13, %v1338_v27 }
 0x25c   : > { %1343 = vmatpush3.bf16.msk.msra.mxu0 %vm1339_vm13, %v1338_v27  ;;  %1359 = vmatpush3.bf16.msk.msra.mxu1 %vm1339_vm13, %v1338_v27 }
 0x25d   : > { %1345 = vmatprep.subr.bf16.mxu0 (!%p1173_p1), %v1344_v59  ;;  %1360 = vmatprep.subr.bf16.mxu1 (!%p1173_p1), %v1344_v59 }
 0x2b9   : > { %v775_v28 = vpop.trf.xlu0 }
 0x2ba   : > { %1284 = vmatprep.mubr.msk.f32.mxu0 %vm791_vm14, %v775_v28 }
 0x2bd   : > { %v776_v35 = vpop.trf.xlu0 }
 0x2be   : > { %1285 = vmatmul.mubr.msk.f32.vlgmr.msra.gmra.mrb[8].mxu0 %vm791_vm14, %v776_v35 }
 0x2bf   : > { %1347 = vmatpush3.bf16.msra.mxu0 (!%p1173_p1), %v1344_v59 }
 0x2c0   : > { %1349 = vmatprep.subr.bf16.mxu0 (!%p1173_p1), %v1348_v0 }
 0x2c1   : > { %v777_v36 = vpop.trf.xlu0 }
 0x2c2   : > { %1287 = vmatprep.mubr.msk.f32.mxu1 %vm791_vm14, %v777_v36 }
 0x2c3   : > { %1351 = vmatpush3.bf16.msra.mxu0 (!%p1173_p1), %v1348_v0 }
 0x2c5   : > { %v778_v38 = vpop.trf.xlu0 }
 0x2c6   : > { %1288 = vmatmul.mubr.msk.f32.vlgmr.msra.gmra.mrb[8].mxu1 %vm791_vm14, %v778_v38 }
 0x2c7   : > { %1362 = vmatpush3.bf16.msra.mxu1 (!%p1173_p1), %v1344_v59 }
 0x2c8   : > { %1361 = vmatprep.subr.bf16.mxu1 (!%p1173_p1), %v1348_v0 }
 0x2cb   : > { %1363 = vmatpush3.bf16.msra.mxu1 (!%p1173_p1), %v1348_v0 }
 0x391   : > { %v1286_v37 = vpop.f32.mrb[8].mxu0 }
 0x392   : > { %v890_v43 = vadd.f32 %v1286_v37, %v756_v39  ;;  %v870_v42 = vpop.f32.mrb[9].mxu0 }
 0x393   : > { %v889_v44 = vadd.f32 %v870_v42, %v755_v40 }
 0x394   : > { %894 = vst.msk [vmem:[#allocation2 + $0x8] sm:$0xff] %vm316_vm1, %v890_v43 }
 0x395   : > { %893 = vst.msk [vmem:[#allocation2] sm:$0xff] %vm316_vm1, %v889_v44 }
 0x397   : > { %900 = sbr.rel (%p1173_p1) target bundleno = 1280 (0x500), region = 44 }
 0x399   : > { %v1289_v47 = vpop.f32.mrb[8].mxu1 }
 0x39a   : > { %v892_v48 = vadd.f32 %v1289_v47, %v758_v45  ;;  %v880_v49 = vpop.f32.mrb[9].mxu1 }
 0x39b   : > { %v891_v51 = vadd.f32 %v880_v49, %v757_v46  ;;  %v902_v58 = vld [vmem:[#allocation2 + $0x8] sm:$0xff] (!%p1173_p1) }
 0x39c   : > { %896 = vst.msk [vmem:[#allocation2 + $0x18] sm:$0xff] %vm316_vm1, %v892_v48  ;;  %v901_v52 = vld [vmem:[#allocation2] sm:$0xff] (!%p1173_p1) }
 0x39d   : > { %895 = vst.msk [vmem:[#allocation2 + $0x10] sm:$0xff] %vm316_vm1, %v891_v51  ;;  %909 = vxpose.xlu0.b32.start [1/4] (short) (narrow) (!%p1173_p1), %v901_v52, 32 }
 0x3a1   : > { %910 = vxpose.xlu0.b32.cont [2/4] (short) (narrow) %v902_v58, 32 }
 0x3a3   : > { %v904_v5 = vld [vmem:[#allocation2 + $0x18] sm:$0xff] }
 0x3a4   : > { %v903_v1 = vld [vmem:[#allocation2 + $0x10] sm:$0xff] }
 0x3a5   : > { %911 = vxpose.xlu0.b32.cont [3/4] (short) (narrow) %v903_v1, 32 }
 0x3a9   : > { %912 = vxpose.xlu0.b32.end [4/4] (short) (narrow) %v904_v5, 32 }
 0x41d   : > { %v925_v6 = vpop.trf.xlu0 }
 0x41e   : > { %1298 = vmatprep.mubr.msk.f32.mxu0 %vm316_vm1, %v925_v6 }
 0x421   : > { %v926_v9 = vpop.trf.xlu0 }
 0x422   : > { %1299 = vmatmul.mubr.msk.f32.vlgmr.msra.gmra.mrb[0].mxu0 %vm316_vm1, %v926_v9 }
 0x425   : > { %v927_v55 = vpop.trf.xlu0 }
 0x426   : > { %1301 = vmatprep.mubr.msk.f32.mxu1 %vm316_vm1, %v927_v55 }
 0x429   : > { %v928_v62 = vpop.trf.xlu0 }
 0x42a   : > { %1302 = vmatmul.mubr.msk.f32.vlgmr.msra.gmra.mrb[0].mxu1 %vm316_vm1, %v928_v62 }
 0x4f5   : > { %v1300_v41 = vpop.f32.mrb[0].mxu0 }
 0x4f6   : > { %1039 = vst.msk [vmem:[%s1710_s24 + $0x8] sm:$0xff] %vm316_vm1, %v1300_v41  ;;  %v1019_v10 = vpop.f32.mrb[1].mxu0 }
 0x4f7   : > { %1038 = vst.msk [vmem:[%s1710_s24] sm:$0xff] %vm316_vm1, %v1019_v10 }
 0x4fd   : > { %v1303_v12 = vpop.f32.mrb[0].mxu1 }
 0x4fe   : > { %1041 = vst.msk [vmem:[%s1710_s24 + $0x18] sm:$0xff] %vm316_vm1, %v1303_v12  ;;  %v1029_v50 = vpop.f32.mrb[1].mxu1 }
 0x4ff   : > { %1040 = vst.msk [vmem:[%s1710_s24 + $0x10] sm:$0xff] %vm316_vm1, %v1029_v50 }
 0x500 PF: > { %s1183_s18 = sshll.u32 %s1587_s19, 9  ;;  %s1056_s23 = sshll.u32 %s1710_s24, 4  ;;  %s1986_s23 = int_to_ptr.vmem [resolvable:$true] %s1056_s23 }
 0x501   : > { %s1983_s11 = scalar_lea.hbm %s2046_s4, %s1183_s18  ;;  %s1990_s12 = scalar_lea.sflag [#allocation4], %s223_s6 }
 0x502   : > { %s1505_s13 = scalar_lea.vmem %s1986_s23, 512  ;;  %s1602_s19 = smov [#allocation3]  }
 0x503   : > { %p1506_p2 = scmp.ne.s32.totalorder %s1986_s23, %s1505_s13  ;;  %s1509_s14 = sshll.u32 %s1602_s19, 4  ;;  %s1510_s14 = int_to_ptr.vmem [resolvable:$false] %s1509_s14 }
 0x504   : > { %s1511_s29 = scalar_lea.vmem %s1510_s14, 1024  ;;  %p1512_p6 = scmp.lt.s32.totalorder %s1986_s23, %s1510_s14 }
 0x505   : > { %p1507_p4 = pnand %p1506_p2, %p1679_p3  ;;  %p1513_p7 = scmp.lt.s32.totalorder %s1511_s29, %s1505_s13 }
 0x507   : > { %p1508_p5 = pneg %p1507_p4  ;;  %p1514_p8 = por %p1513_p7, %p1512_p6 }
 0x509   : > { %p1515_p10 = pnand %p1514_p8, %p1508_p5 }
 0x50b   : > { %1518 = shalt.err (!%p1515_p10)
}
 0x50c   : > { %s1519_s6 = scalar_lea.hbm %s1983_s11, 512  ;;  %s1523_s7 = scalar_lea.hbm %s2046_s4, 1024 }
 0x50d   : > { %p1520_p11 = scmp.ne.s32.totalorder %s1983_s11, %s1519_s6  ;;  %p1524_p0 = scmp.lt.u32.totalorder %s1983_s11, %s2046_s4 }
 0x50e   : > { %p1525_p1 = scmp.lt.u32.totalorder %s1523_s7, %s1519_s6  ;;  %p1527_p4 = scmp.lt.u32.totalorder %s1519_s6, %s1983_s11 }
 0x50f   : > { %p1521_p12 = pnand %p1520_p11, %p1679_p3 }
 0x510   : > { %p1526_p2 = por %p1525_p1, %p1524_p0 }
 0x511   : > { %p1522_p13 = pneg %p1521_p12 }
 0x512   : > { %p1528_p5 = por %p1527_p4, %p1526_p2 }
 0x514   : > { %p1529_p6 = pnand %p1528_p5, %p1522_p13 }
 0x516   : > { %1532 = shalt.err (!%p1529_p6)
}
 0x517   : > { %s1603_s8 = smov 128   ;;  %s1604_s10 = smov 8  }
 0x518   : > { %1365 = dma.vmem_to_hbm [thread:$0]  (%p1679_p3), %s1986_s23, 512, %s1983_s11, %s1990_s12, %s1603_s8, %s1603_s8, %s1604_s10  }
 0x519 PF: > { %p1371_p7 = scmp.ge.s32.totalorder %s1599_s22, 2  ;;  %s1071_s13 = sand.u32 1, %s1571_s15  }
 0x51a   : > { %s1072_s19 = scalar_lea.sflag [#allocation4], %s1071_s13 }
 0x51b   : > { %p1368_p8 = pnand %p1371_p7, %p1689_p9 }
 0x51d   : > { %1566 = dma.done.wait (!%p1368_p8), %s1072_s19, 512  }
 0x51e   : > { %1568 = vsyncadd (!%p1368_p8), %s1072_s19, 4294966784  ;;  %s17_s22 = sadd.s32 1, %s1599_s22   ;;  %s2051_s15 = smov %s1575_s16 }
 0x51f   : > { %p14_p10 = scmp.ge.s32.totalorder %s17_s22, 10   ;;  %s2052_s16 = smov %s1579_s17 }
 0x520   : > { %s2053_s17 = smov %s1697_s5  ;;  %s2054_s18 = smov %s1591_s20 }
 0x521   : > { %s2055_s19 = smov %s1595_s21  ;;  %s2056_s20 = smov %s2059_s25 }
 0x522   : > { %s2057_s21 = smov %s2063_s26  ;;  %16 = sbr.rel (!%p14_p10) target bundleno = 5 (0x5), region = 79 }
 0x529   :  { %1077 = vsyncpa [#allocation4], 1 }
 0x52a   :  { %1079 = vsyncpa [#allocation4 + $0x1], 1 }

</bundles_post_ra>
